<compile_context>
chip_gen: v5e
topology: v5e:2x2
jax: 0.10.0
libtpu: 0.0.40
codegen_flags: <defaults>
</compile_context>

<pallas_src>
from functools import partial

import jax
import jax.numpy as jnp
import numpy as np
from jax.experimental import pallas as pl
from jax.experimental.pallas import tpu as pltpu


def compgcn_kernel(inc_ref, adj_ref, h_ref, eh_ref, scale_ref, w1_ref,
                   bias_ref, out_ref):
    # inc_ref  : [Np, Ep] bf16   dst-incidence (exact 0/1)
    # adj_ref  : [Np, Np] bf16   dst<-src adjacency (exact edge counts)
    # h_ref    : [Np, Fp] bf16   node features
    # eh_ref   : [Ep, Fp] bf16   edge features
    # scale_ref: [Np, 2]  f32    col 0 = 1/in-degree, col 1 = norm
    # w1_ref   : [Fp, Op] bf16   msg_inv_linear weight, pre-transposed
    # bias_ref : [2,  Op] f32    row 0 = b1, row 1 = bias_v
    # out_ref  : [Np, Op] f32
    inv_deg = scale_ref[:, 0:1]                                     # [Np, 1]
    norm = scale_ref[:, 1:2]                                        # [Np, 1]

    # Stage 1: mean over incoming edges of h[v]*e_h[e]; the 1/deg scaling is
    # applied in f32 to the matmul output (cheap VPU work hidden under MXU).
    # Zero in-degree nodes carry inv_deg == 0 -> h_o_r == 0, matching DGL's
    # mean-over-empty-set convention.
    sum_e = jnp.dot(inc_ref[...], eh_ref[...],
                    preferred_element_type=jnp.float32)             # [Np, Fp]
    h_o_r = h_ref[...].astype(jnp.float32) * sum_e * inv_deg

    # Stage 2: msg_inv_linear.
    h_s = jnp.dot(h_o_r.astype(jnp.bfloat16), w1_ref[...],
                  preferred_element_type=jnp.float32) + bias_ref[0:1, :]

    # Stage 3: sum over source nodes, then apply norm (f32) + bias_v.
    agg = jnp.dot(adj_ref[...], h_s.astype(jnp.bfloat16),
                  preferred_element_type=jnp.float32)               # [Np, Op]
    out_ref[...] = agg * norm + bias_ref[1:2, :]


def _round_up(x, m):
    return ((x + m - 1) // m) * m


def _pad2(x, rows, cols):
    """Zero-pad the last two dims of x up to (rows, cols) in one jnp.pad."""
    pad = [(0, 0)] * (x.ndim - 2) + [(0, rows - x.shape[-2]),
                                     (0, cols - x.shape[-1])]
    return jnp.pad(x, pad)


def prepare_params(w1, b1, bias_v):
    """Pad / cast the (constant) parameters ONCE, outside the forward path."""
    fout, fin = w1.shape
    Fp = _round_up(fin, 128)
    Op = _round_up(fout, 128)
    w1_p = jnp.pad(w1.T.astype(jnp.bfloat16), ((0, Fp - fin), (0, Op - fout)))
    biases = jnp.pad(
        jnp.stack([jnp.reshape(b1, (-1,)),
                   jnp.reshape(bias_v, (-1,))]).astype(jnp.float32),
        ((0, 0), (0, Op - fout)))
    return w1_p, biases                         # [Fp, Op] bf16, [2, Op] f32


@partial(jax.jit, static_argnames=("fout",))
def compgcn_dg_glean_forward(inc, adj, h, e_h, norm, inv_deg, w1_p, biases, *,
                             fout):
    """Batched CompGCN_dg_glean forward over G independent graphs."""
    G, N, E = inc.shape
    fin = h.shape[-1]
    Fp, Op = w1_p.shape

    Np = _round_up(N, 16)     # row / sublane dim (bf16 tile = 16 rows)
    Ep = _round_up(E, 128)    # shared stage-1 contraction dim: lane-dense

    bf = jnp.bfloat16
    inc_p = _pad2(inc.astype(bf), Np, Ep)                       # [G, Np, Ep]
    adj_p = _pad2(adj.astype(bf), Np, Np)                       # [G, Np, Np]
    h_p = _pad2(h.astype(bf), Np, Fp)                           # [G, Np, Fp]
    eh_p = _pad2(e_h.astype(bf), Ep, Fp)                        # [G, Ep, Fp]
    scales = _pad2(jnp.concatenate([inv_deg, norm],
                                   axis=-1).astype(jnp.float32),
                   Np, 2)                                       # [G, Np, 2]

    out_p = pl.pallas_call(
        compgcn_kernel,
        out_shape=jax.ShapeDtypeStruct((G, Np, Op), jnp.float32),
        grid=(G,),
        in_specs=[
            pl.BlockSpec((None, Np, Ep), lambda g: (g, 0, 0)),  # inc
            pl.BlockSpec((None, Np, Np), lambda g: (g, 0, 0)),  # adj
            pl.BlockSpec((None, Np, Fp), lambda g: (g, 0, 0)),  # h
            pl.BlockSpec((None, Ep, Fp), lambda g: (g, 0, 0)),  # e_h
            pl.BlockSpec((None, Np, 2), lambda g: (g, 0, 0)),   # [1/deg, norm]
            pl.BlockSpec((Fp, Op), lambda g: (0, 0)),           # W1^T (shared)
            pl.BlockSpec((2, Op), lambda g: (0, 0)),            # [b1; bias_v]
        ],
        out_specs=pl.BlockSpec((None, Np, Op), lambda g: (g, 0, 0)),
        compiler_params=pltpu.CompilerParams(
            dimension_semantics=("parallel",)),   # v7x: shard graphs over TCs
    )(inc_p, adj_p, h_p, eh_p, scales, w1_p, biases)

    return out_p[:, :N, :fout]


def reference_forward_f32(inc, adj, h, e_h, norm, inv_deg, w1_t, b1, bias_v):
    sum_e = inc @ e_h
    h_o_r = h * sum_e * inv_deg
    h_s = h_o_r @ w1_t + b1.reshape(1, -1)
    agg = adj @ h_s
    return agg * norm + bias_v.reshape(1, -1)


def reference_forward_bf16(inc, adj, h, e_h, norm, inv_deg, w1_t, b1, bias_v):
    # Same bf16 operand quantization + f32 scaling order as the kernel.
    bf = lambda x: x.astype(jnp.bfloat16)
    sum_e = jnp.dot(bf(inc), bf(e_h), preferred_element_type=jnp.float32)
    h_o_r = bf(h).astype(jnp.float32) * sum_e * inv_deg
    h_s = jnp.dot(bf(h_o_r), bf(w1_t),
                  preferred_element_type=jnp.float32) + b1.reshape(1, -1)
    agg = jnp.dot(bf(adj), bf(h_s), preferred_element_type=jnp.float32)
    return agg * norm + bias_v.reshape(1, -1)


if __name__ == "__main__":
    key = jax.random.PRNGKey(0)
    ks = jax.random.split(key, 8)

    # Small, forward-consistent shapes; a batch of G independent graphs is
    # processed in ONE pallas_call via the grid axis (per the perf review).
    G = 4                  # graphs per call ("parallel" grid axis)
    N = 16                 # nodes per graph
    E = 48                 # edges per graph
    node_in_feat = 32
    node_out_feat = 32
    rel_in_feat = 16       # rel_linear is dead code in forward(); init only
    rel_out_feat = 16

    # Graphs (deterministic): random src/dst per edge, per graph.
    src = jax.random.randint(ks[0], (G, E), 0, N)
    dst = jax.random.randint(ks[1], (G, E), 0, N)
    inc = jnp.swapaxes(jax.nn.one_hot(dst, N, dtype=jnp.float32), 1, 2)  # [G,N,E]
    adj = jnp.matmul(inc, jax.nn.one_hot(src, N, dtype=jnp.float32))     # [G,N,N]
    deg = jnp.sum(inc, axis=2, keepdims=True)                            # [G,N,1]
    inv_deg = jnp.where(deg > 0, 1.0 / jnp.maximum(deg, 1.0), 0.0)

    # Node / edge data.
    h = jax.random.normal(ks[2], (G, N, node_in_feat), jnp.float32)
    e_h = jax.random.normal(ks[3], (G, E, node_in_feat), jnp.float32)
    norm = jax.random.uniform(ks[4], (G, N, 1), jnp.float32, 0.1, 1.0)

    # Parameters (deterministic synthetic init), shared across graphs.
    w1 = jax.random.normal(ks[5], (node_out_feat, node_in_feat),
                           jnp.float32) * (1.0 / np.sqrt(node_in_feat))
    b1 = jax.random.normal(ks[6], (node_out_feat,), jnp.float32) * 0.01
    bias_v = jnp.zeros((node_out_feat,), jnp.float32)   # torch.nn.init.zeros_
    # rel_linear params exist in the module but are never used in forward():
    _rel_w = jax.random.normal(ks[7], (rel_out_feat, rel_in_feat), jnp.float32)
    _rel_b = jnp.zeros((rel_out_feat,), jnp.float32)

    w1_t = w1.T                                          # [Fin, Fout]

    # Pad / cast parameters ONCE (hoisted out of the per-forward path).
    w1_p, biases = prepare_params(w1, b1, bias_v)

    out = compgcn_dg_glean_forward(inc, adj, h, e_h, norm, inv_deg,
                                   w1_p, biases, fout=node_out_feat)
    out = jax.block_until_ready(out)

    # Tight check vs a reference using the same bf16 operand quantization.
    ref_q = jax.vmap(reference_forward_bf16,
                     in_axes=(0, 0, 0, 0, 0, 0, None, None, None))(
        inc, adj, h, e_h, norm, inv_deg, w1_t, b1, bias_v)
    np.testing.assert_allclose(np.asarray(out), np.asarray(ref_q),
                               rtol=1e-2, atol=1e-2)

    # Sanity check vs the full-f32 reference (bf16 MXU operands => looser tol).
    ref = jax.vmap(reference_forward_f32,
                   in_axes=(0, 0, 0, 0, 0, 0, None, None, None))(
        inc, adj, h, e_h, norm, inv_deg, w1_t, b1, bias_v)
    np.testing.assert_allclose(np.asarray(out), np.asarray(ref),
                               rtol=1e-1, atol=1e-1)
    print("KERNEL_OK")
</pallas_src>

<mosaic_0001>
module attributes {stable_mosaic.version = 11 : i64} {
  func.func @compgcn_kernel(%arg0: i32, %arg1: memref<1x16x128xbf16, #tpu.memory_space<vmem>>, %arg2: memref<1x16x16xbf16, #tpu.memory_space<vmem>>, %arg3: memref<1x16x128xbf16, #tpu.memory_space<vmem>>, %arg4: memref<1x128x128xbf16, #tpu.memory_space<vmem>>, %arg5: memref<1x16x2xf32, #tpu.memory_space<vmem>>, %arg6: memref<128x128xbf16, #tpu.memory_space<vmem>>, %arg7: memref<2x128xf32, #tpu.memory_space<vmem>>, %arg8: memref<1x16x128xf32, #tpu.memory_space<vmem>>) attributes {dimension_semantics = [#tpu.dimension_semantics<parallel>], iteration_bounds = array<i64: 4>, scalar_prefetch = 0 : i64, scratch_operands = 0 : i64, tpu.core_type = #tpu.core_type<tc>, window_params = [{transform_indices = @transform_0, window_bounds = array<i64: 1, 16, 128>}, {transform_indices = @transform_1, window_bounds = array<i64: 1, 16, 16>}, {transform_indices = @transform_2, window_bounds = array<i64: 1, 16, 128>}, {transform_indices = @transform_3, window_bounds = array<i64: 1, 128, 128>}, {transform_indices = @transform_4, window_bounds = array<i64: 1, 16, 2>}, {pipeline_mode = #tpu.pipeline_mode<synchronous>, transform_indices = @transform_5, window_bounds = array<i64: 128, 128>}, {pipeline_mode = #tpu.pipeline_mode<synchronous>, transform_indices = @transform_6, window_bounds = array<i64: 2, 128>}, {transform_indices = @transform_7, window_bounds = array<i64: 1, 16, 128>}]} {
    %c0 = arith.constant 0 : index
    %c0_0 = arith.constant 0 : index
    %c0_1 = arith.constant 0 : index
    %0 = vector.load %arg5[%c0, %c0_0, %c0_1] : memref<1x16x2xf32, #tpu.memory_space<vmem>>, vector<1x16x1xf32>
    %1 = vector.shape_cast %0 : vector<1x16x1xf32> to vector<16x1xf32>
    %c0_2 = arith.constant 0 : index
    %c0_3 = arith.constant 0 : index
    %c1 = arith.constant 1 : index
    %2 = vector.load %arg5[%c0_2, %c0_3, %c1] : memref<1x16x2xf32, #tpu.memory_space<vmem>>, vector<1x16x1xf32>
    %3 = vector.shape_cast %2 : vector<1x16x1xf32> to vector<16x1xf32>
    %c0_4 = arith.constant 0 : index
    %c0_5 = arith.constant 0 : index
    %c0_6 = arith.constant 0 : index
    %4 = vector.load %arg1[%c0_4, %c0_5, %c0_6] : memref<1x16x128xbf16, #tpu.memory_space<vmem>>, vector<1x16x128xbf16>
    %5 = vector.shape_cast %4 : vector<1x16x128xbf16> to vector<16x128xbf16>
    %c0_7 = arith.constant 0 : index
    %c0_8 = arith.constant 0 : index
    %c0_9 = arith.constant 0 : index
    %6 = vector.load %arg4[%c0_7, %c0_8, %c0_9] : memref<1x128x128xbf16, #tpu.memory_space<vmem>>, vector<1x128x128xbf16>
    %7 = vector.shape_cast %6 : vector<1x128x128xbf16> to vector<128x128xbf16>
    %cst = arith.constant dense<0.000000e+00> : vector<16x128xf32>
    %8 = tpu.matmul %5, %7, %cst {dimension_numbers = #tpu.dot_dimension_numbers<[1], [0], [0], [1], [0, 0, 1, 1], [], []>} : vector<16x128xbf16>, vector<128x128xbf16>, vector<16x128xf32> -> vector<16x128xf32>
    %c0_10 = arith.constant 0 : index
    %c0_11 = arith.constant 0 : index
    %c0_12 = arith.constant 0 : index
    %9 = vector.load %arg3[%c0_10, %c0_11, %c0_12] : memref<1x16x128xbf16, #tpu.memory_space<vmem>>, vector<1x16x128xbf16>
    %10 = vector.shape_cast %9 : vector<1x16x128xbf16> to vector<16x128xbf16>
    %11 = arith.extf %10 : vector<16x128xbf16> to vector<16x128xf32>
    %12 = arith.mulf %11, %8 : vector<16x128xf32>
    %13 = vector.broadcast %1 : vector<16x1xf32> to vector<16x128xf32>
    %14 = arith.mulf %12, %13 : vector<16x128xf32>
    %15 = arith.truncf %14 : vector<16x128xf32> to vector<16x128xbf16>
    %c0_13 = arith.constant 0 : index
    %c0_14 = arith.constant 0 : index
    %16 = vector.load %arg6[%c0_13, %c0_14] : memref<128x128xbf16, #tpu.memory_space<vmem>>, vector<128x128xbf16>
    %cst_15 = arith.constant dense<0.000000e+00> : vector<16x128xf32>
    %17 = tpu.matmul %15, %16, %cst_15 {dimension_numbers = #tpu.dot_dimension_numbers<[1], [0], [0], [1], [0, 0, 1, 1], [], []>} : vector<16x128xbf16>, vector<128x128xbf16>, vector<16x128xf32> -> vector<16x128xf32>
    %c0_16 = arith.constant 0 : index
    %c0_17 = arith.constant 0 : index
    %18 = vector.load %arg7[%c0_16, %c0_17] : memref<2x128xf32, #tpu.memory_space<vmem>>, vector<1x128xf32>
    %19 = vector.broadcast %18 : vector<1x128xf32> to vector<16x128xf32>
    %20 = arith.addf %17, %19 : vector<16x128xf32>
    %c0_18 = arith.constant 0 : index
    %c0_19 = arith.constant 0 : index
    %c0_20 = arith.constant 0 : index
    %21 = vector.load %arg2[%c0_18, %c0_19, %c0_20] : memref<1x16x16xbf16, #tpu.memory_space<vmem>>, vector<1x16x16xbf16>
    %22 = vector.shape_cast %21 : vector<1x16x16xbf16> to vector<16x16xbf16>
    %23 = arith.truncf %20 : vector<16x128xf32> to vector<16x128xbf16>
    %cst_21 = arith.constant dense<0.000000e+00> : vector<16x128xf32>
    %24 = tpu.matmul %22, %23, %cst_21 {dimension_numbers = #tpu.dot_dimension_numbers<[1], [0], [0], [1], [0, 0, 1, 1], [], []>} : vector<16x16xbf16>, vector<16x128xbf16>, vector<16x128xf32> -> vector<16x128xf32>
    %25 = vector.broadcast %3 : vector<16x1xf32> to vector<16x128xf32>
    %26 = arith.mulf %24, %25 : vector<16x128xf32>
    %c1_22 = arith.constant 1 : index
    %c0_23 = arith.constant 0 : index
    %27 = vector.load %arg7[%c1_22, %c0_23] : memref<2x128xf32, #tpu.memory_space<vmem>>, vector<1x128xf32>
    %28 = vector.broadcast %27 : vector<1x128xf32> to vector<16x128xf32>
    %29 = arith.addf %26, %28 : vector<16x128xf32>
    %c0_24 = arith.constant 0 : index
    %c0_25 = arith.constant 0 : index
    %c0_26 = arith.constant 0 : index
    %30 = vector.load %arg8[%c0_24, %c0_25, %c0_26] : memref<1x16x128xf32, #tpu.memory_space<vmem>>, vector<1x16x128xf32>
    %31 = vector.shape_cast %30 : vector<1x16x128xf32> to vector<16x128xf32>
    %32 = vector.shape_cast %29 : vector<16x128xf32> to vector<1x16x128xf32>
    tpu.vector_store %arg8[%c0_24, %c0_25, %c0_26], %32 {strides = array<i32>} : memref<1x16x128xf32, #tpu.memory_space<vmem>>, vector<1x16x128xf32>,
    return
  }
  func.func @transform_0(%arg0: i32) -> (i32, i32, i32) {
    %c0_i32 = arith.constant 0 : i32
    %c0_i32_0 = arith.constant 0 : i32
    %c0_i32_1 = arith.constant 0 : i32
    return %arg0, %c0_i32, %c0_i32_0 : i32, i32, i32
  }
  func.func @transform_1(%arg0: i32) -> (i32, i32, i32) {
    %c0_i32 = arith.constant 0 : i32
    %c0_i32_0 = arith.constant 0 : i32
    %c0_i32_1 = arith.constant 0 : i32
    return %arg0, %c0_i32, %c0_i32_0 : i32, i32, i32
  }
  func.func @transform_2(%arg0: i32) -> (i32, i32, i32) {
    %c0_i32 = arith.constant 0 : i32
    %c0_i32_0 = arith.constant 0 : i32
    %c0_i32_1 = arith.constant 0 : i32
    return %arg0, %c0_i32, %c0_i32_0 : i32, i32, i32
  }
  func.func @transform_3(%arg0: i32) -> (i32, i32, i32) {
    %c0_i32 = arith.constant 0 : i32
    %c0_i32_0 = arith.constant 0 : i32
    %c0_i32_1 = arith.constant 0 : i32
    return %arg0, %c0_i32, %c0_i32_0 : i32, i32, i32
  }
  func.func @transform_4(%arg0: i32) -> (i32, i32, i32) {
    %c0_i32 = arith.constant 0 : i32
    %c0_i32_0 = arith.constant 0 : i32
    %c0_i32_1 = arith.constant 0 : i32
    return %arg0, %c0_i32, %c0_i32_0 : i32, i32, i32
  }
  func.func @transform_5(%arg0: i32) -> (i32, i32) {
    %c0_i32 = arith.constant 0 : i32
    %c0_i32_0 = arith.constant 0 : i32
    %c0_i32_1 = arith.constant 0 : i32
    return %c0_i32, %c0_i32_0 : i32, i32
  }
  func.func @transform_6(%arg0: i32) -> (i32, i32) {
    %c0_i32 = arith.constant 0 : i32
    %c0_i32_0 = arith.constant 0 : i32
    %c0_i32_1 = arith.constant 0 : i32
    return %c0_i32, %c0_i32_0 : i32, i32
  }
  func.func @transform_7(%arg0: i32) -> (i32, i32, i32) {
    %c0_i32 = arith.constant 0 : i32
    %c0_i32_0 = arith.constant 0 : i32
    %c0_i32_1 = arith.constant 0 : i32
    return %arg0, %c0_i32, %c0_i32_0 : i32, i32, i32
  }
}

</mosaic_0001>

<bundles_post_ra>
// kernel: compgcn_dg_glean_forward.1
= control target key start
LH: loop header
LB: loop body
LE: loop exit
PB: predicated region body
PF: predicated region fallthrough
CT: control target
= control target key end

     0   :  { %12 = vsyncpa [#allocation3], 0  ;;  %s1127_s0 = inlined_call_operand.vmem [shape: bf16[4,16,128], index: 0, kind: input, shape index: {}]   ;;  %s1128_s1 = inlined_call_operand.vmem [shape: bf16[4,16,16], index: 1, kind: input, shape index: {}]   ;;  %s1129_s2 = inlined_call_operand.vmem [shape: bf16[4,16,128], index: 2, kind: input, shape index: {}]   ;;  %s1130_s3 = inlined_call_operand.vmem [shape: bf16[4,128,128], index: 3, kind: input, shape index: {}]   ;;  %s1131_s4 = inlined_call_operand.vmem [shape: f32[4,16,2], index: 4, kind: input, shape index: {}]   ;;  %s1132_s5 = inlined_call_operand.vmem [shape: bf16[128,128], index: 5, kind: input, shape index: {}]   ;;  %s1133_s6 = inlined_call_operand.vmem [shape: f32[2,128], index: 6, kind: input, shape index: {}]   ;;  %s1134_s7 = inlined_call_operand.hbm [shape: f32[4,16,128], index: 7, kind: output, shape index: {}]  }
   0x1   :  { %14 = vsyncpa [#allocation3 + $0x1], 0  ;;  %s990_s24 = smov 0   ;;  %s992_s25 = smov 0  }
   0x2   :  { %s994_s26 = smov 0   ;;  %s996_s27 = smov 0  }
   0x3 LB: > { %s1011_s28 = sadd.s32 4294967295, %s944_s27   ;;  %s713_s29 = sadd.s32 4294967294, %s944_s27   ;;  %s944_s27 = sphi %s996_s27, %s1140_s27   ;;  %s940_s26 = sphi %s994_s26, %s1139_s26   ;;  %s936_s25 = sphi %s992_s25, %s1138_s25   ;;  %s932_s24 = sphi %s990_s24, %s1137_s24  }
   0x4   : > { %s1015_s30 = sadd.s32 1, %s944_s27   ;;  %s199_s8 = sadd.s32 1, %s940_s26 }
   0x5   : > { %s196_s9 = ssub.s32 %s944_s27, %s1015_s30  ;;  %p209_p0 = scmp.ne.s32.totalorder %s940_s26, %s936_s25 }
   0x6   : > { %p197_p1 = scmp.eq.s32.totalorder %s196_s9, 0  ;;  %p210_p2 = scmp.eq.s32.totalorder %s1011_s28, 3 }
   0x7   : > { %p215_p3 = scmp.ne.s32.totalorder %s936_s25, %s932_s24  ;;  %p216_p4 = scmp.eq.s32.totalorder %s713_s29, 3 }
   0x8   : > { %s1026_s10 = scalar_select %p197_p1, %s940_s26, %s199_s8  }
   0x9   : > { %p1028_p5 = por %p210_p2, %p209_p0  ;;  %p1032_p6 = por %p216_p4, %p215_p3 }
   0xa   : > { %p716_p7 = scmp.ge.s32.totalorder %s944_s27, 1  ;;  %p280_p8 = scmp.lt.s32.totalorder %s944_s27, 5 }
   0xc   : > { %p281_p9 = pnand %p716_p7, %p280_p8 }
   0xd   : > { %p332_p10 = scmp.lt.s32.totalorder (!%p281_p9), %s1011_s28, 3  ;;  %s329_s29 = sand.u32 (!%p281_p9), 1, %s936_s25  }
   0xe   : > { %284 = sbr.rel (%p281_p9) target bundleno = 484 (0x1e4), region = 48  ;;  %s588_s22 = scalar_lea.sflag (!%p281_p9), [#allocation3], %s329_s29 }
   0xf   : > { %s902_s8 = scalar_lea.hbm (!%p281_p9), %s1134_s7, 64 }
  0x13   : > { %s1040_s13 = scalar_select %p332_p10, %s1011_s28, 3  ;;  %v946_v2 = vmov 0   ;;  %v827_v4 = vld [vmem:[%s1132_s5 + $0x38] sm:$0xff]  ;;  %v826_v5 = vld [vmem:[%s1132_s5 + $0x30] sm:$0xff]  ;;  %v825_v8 = vld [vmem:[%s1132_s5 + $0x28] sm:$0xff]  ;;  %v947_v32 = vmov 1  }
  0x14   : > { %877 = vset.pattern.permute.xlu0 %v946_v2  ;;  %531 = vmatpush.bf16.msra.mxu1 %v827_v4  ;;  %v824_v15 = vld [vmem:[%s1132_s5 + $0x20] sm:$0xff]  ;;  %v823_v16 = vld [vmem:[%s1132_s5 + $0x18] sm:$0xff]  ;;  %v822_v17 = vld [vmem:[%s1132_s5 + $0x10] sm:$0xff]  ;;  %vm553_vm0 = vcmask 130048  }
  0x15   : > { %s809_s14 = sshll.u32 %s1040_s13, 6  ;;  %s810_s18 = sshll.u32 %s1040_s13, 4  ;;  %v821_v18 = vld [vmem:[%s1132_s5 + $0x8] sm:$0xff]  ;;  %v820_v19 = vld [vmem:[%s1132_s5] sm:$0xff]  ;;  %878 = vset.pattern.permute.xlu1 %v947_v32 }
  0x16   : > { %s351_s17 = scalar_lea.vmem %s1130_s3, %s809_s14  ;;  %s356_s21 = scalar_lea.vmem %s1131_s4, %s810_s18  ;;  %v880_v34 = vld [vmem:[%s1133_s6] ss:$0 sm:$0xff]  ;;  %v881_v41 = vld [vmem:[%s1133_s6 + $0x1] ss:$0 sm:$0xff] }
  0x17   : > { %v819_v0 = vld [vmem:[%s351_s17 + $0x38] sm:$0xff]  ;;  %v818_v1 = vld [vmem:[%s351_s17 + $0x30] sm:$0xff]  ;;  %v358_v3 = vld [vmem:[%s356_s21] sm:$0xff]  ;;  %s1060_s15 = sshll.u32 %s1040_s13, 3  ;;  %s829_s14 = sshll.u32 %s1011_s28, 4 }
  0x18   : > { %432 = vmatpush.bf16.msra.mxu0 %v819_v0  ;;  %454 = vperm.xlu0 %877, %v358_v3   ;;  %v817_v6 = vld [vmem:[%s351_s17 + $0x28] sm:$0xff]  ;;  %v816_v9 = vld [vmem:[%s351_s17 + $0x20] sm:$0xff]  ;;  %v815_v10 = vld [vmem:[%s351_s17 + $0x18] sm:$0xff]  ;;  %s336_s19 = scalar_lea.vmem %s1127_s0, %s1060_s15  ;;  %s341_s13 = scalar_lea.vmem %s1128_s1, %s1060_s15 }
  0x19   : > { %v359_v7 = vld [vmem:[%s356_s21 + $0x8] sm:$0xff]  ;;  %532 = vmatpush.bf16.msra.mxu1 %v826_v5  ;;  %v814_v11 = vld [vmem:[%s351_s17 + $0x10] sm:$0xff]  ;;  %v812_v13 = vld [vmem:[%s351_s17] sm:$0xff]  ;;  %572 = vperm.xlu1 %878, %v358_v3  }
  0x1a   : > { %v813_v12 = vld [vmem:[%s351_s17 + $0x8] sm:$0xff]  ;;  %v811_v14 = vld [vmem:[%s336_s19] sm:$0xff]  ;;  %s346_s19 = scalar_lea.vmem %s1129_s2, %s1060_s15  ;;  %s717_s17 = sshll.u32 %s329_s29, 4 }
  0x1b   : > { %v831_v22 = vld [vmem:[%s346_s19] sm:$0xff]   ;;  %s599_s15 = scalar_lea.hbm %s1134_s7, %s829_s14  ;;  %s331_s19 = scalar_lea.vmem [#allocation2], %s717_s17 }
  0x1c   : > { %433 = vmatpush.bf16.msra.mxu0 %v818_v1  ;;  %v832_v23 = vunpack.c.l.bf16 %v831_v22  ;;  %v833_v24 = vunpack.c.h.bf16 %v831_v22  ;;  %v828_v39 = vld [vmem:[%s341_s13] sm:$0xff]  ;;  %s600_s20 = sshll.u32 %s331_s19, 4  ;;  %s602_s21 = sshll.u32 %s599_s15, 4  ;;  %s601_s20 = int_to_ptr.vmem [resolvable:$true] %s600_s20  ;;  %s603_s21 = int_to_ptr.hbm [resolvable:$true] %s602_s21 }
  0x1d   : > { %533 = vmatpush.bf16.msra.mxu1 %v825_v8  ;;  %s896_s23 = sshra.s32 %s603_s21, 4  ;;  %s897_s23 = int_to_ptr.hbm [resolvable:$true] %s896_s23 }
  0x1e   : > { %s898_s28 = scalar_lea.hbm %s897_s23, 16  ;;  %p903_p0 = scmp.lt.s32.totalorder %s897_s23, %s1134_s7 }
  0x1f   : > { %p899_p11 = scmp.ne.s32.totalorder %s897_s23, %s898_s28  ;;  %p904_p1 = scmp.lt.s32.totalorder %s902_s8, %s898_s28 }
  0x20   : > { %434 = vmatpush.bf16.msra.mxu0 %v817_v6  ;;  %459 = vperm.xlu0 %877, %v359_v7  }
  0x21   : > { %534 = vmatpush.bf16.msra.mxu1 %v824_v15  ;;  %576 = vperm.xlu1 %878, %v359_v7   ;;  %p900_p12 = pnand %p899_p11, %p1028_p5  ;;  %p905_p2 = por %p904_p1, %p903_p0 }
  0x23   : > { %p901_p13 = pneg %p900_p12 }
  0x24   : > { %435 = vmatpush.bf16.msra.mxu0 %v816_v9 }
  0x25   : > { %535 = vmatpush.bf16.msra.mxu1 %v823_v16  ;;  %p906_p3 = pnand %p905_p2, %p901_p13 }
  0x28   : > { %436 = vmatpush.bf16.msra.mxu0 %v815_v10  ;;  %879 = vset.pattern.permute.xlu0 %v947_v32 }
  0x29   : > { %536 = vmatpush.bf16.msra.mxu1 %v822_v17 }
  0x2c   : > { %437 = vmatpush.bf16.msra.mxu0 %v814_v11 }
  0x2d   : > { %537 = vmatpush.bf16.msra.mxu1 %v821_v18 }
  0x30   : > { %438 = vmatpush.bf16.msra.mxu0 %v813_v12 }
  0x31   : > { %538 = vmatpush.bf16.msra.mxu1 %v820_v19 }
  0x34   : > { %439 = vmatpush.bf16.msra.mxu0 %v812_v13 }
  0x37   : > { %440 = vmatmul.bf16.vlgmr.msra.gmra.mxu0 %v811_v14 }
  0x8a   : > { %v455_v20 = vpop.permute.xlu0 %454 }
  0x8b   : > { %v573_v40 = vpop.permute.xlu1 %572 }
  0x92   : > { %v460_v28 = vpop.permute.xlu0 %459 }
  0x93   : > { %v577_v45 = vpop.permute.xlu1 %576 }
  0xb4   : > { %v441_v21 = vpop.f32.mrf.mxu0 }
  0xb5   : > { %v450_v25 = vmul.f32 %v832_v23, %v441_v21 }
  0xb7   : > { %v462_v29 = vmul.f32 %v455_v20, %v450_v25 }
  0xbc   : > { %v443_v26 = vpop.f32.mrf.mxu0 }
  0xbd   : > { %v451_v27 = vmul.f32 %v833_v24, %v443_v26 }
  0xbf   : > { %v463_v30 = vmul.f32 %v460_v28, %v451_v27 }
  0xc1   : > { %v464_v31 = vpack.c.bf16 %v463_v30, %v462_v29 }
  0xc3   : > { %539 = vmatmul.bf16.vlgmr.msra.gmra.mxu1 %v464_v31 }
 0x140   : > { %v540_v33 = vpop.f32.mrf.mxu1 }
 0x141   : > { %v541_v36 = vadd.f32 %v880_v34, %v540_v33 }
 0x148   : > { %v542_v35 = vpop.f32.mrf.mxu1 }
 0x149   : > { %v543_v37 = vadd.f32 %v880_v34, %v542_v35 }
 0x14b   : > { %v547_v38 = vpack.c.bf16 %v543_v37, %v541_v36 }
 0x14d   : > { %564 = vmatpush.bf16.msra.mxu2 %v547_v38 }
 0x150   : > { %800 = vmatmul.msk.bf16.vlgmr.msra.gmra.mxu2 %vm553_vm0, %v828_v39 }
 0x1d3   : > { %v566_v42 = vpop.f32.mrf.mxu2 }
 0x1d4   : > { %v579_v43 = vmul.f32 %v573_v40, %v566_v42 }
 0x1d6   : > { %v583_v44 = vadd.f32 %v881_v41, %v579_v43 }
 0x1d8   : > { %585 = vst [vmem:[%s331_s19] sm:$0xff] %v583_v44 }
 0x1db   : > { %v568_v46 = vpop.f32.mrf.mxu2 }
 0x1dc   : > { %v580_v47 = vmul.f32 %v577_v45, %v568_v46 }
 0x1de   : > { %v584_v48 = vadd.f32 %v881_v41, %v580_v47 }
 0x1e0   : > { %586 = vst [vmem:[%s331_s19 + $0x8] sm:$0xff] %v584_v48 }
 0x1e1   : > { %909 = shalt.err (!%p906_p3)
}
 0x1e2   : > { %s948_s29 = smov 128   ;;  %s949_s16 = smov 8  }
 0x1e3   : > { %834 = dma.vmem_to_hbm [thread:$0]  (%p1028_p5), %s601_s20, 256, %s603_s21, %s588_s22, %s948_s29, %s948_s29, %s949_s16  }
 0x1e4 PF: > { %p840_p4 = scmp.ge.s32.totalorder %s944_s27, 2  ;;  %s617_s18 = sand.u32 1, %s932_s24  }
 0x1e5   : > { %s618_s15 = scalar_lea.sflag [#allocation3], %s617_s18 }
 0x1e6   : > { %p837_p7 = pnand %p840_p4, %p1032_p6 }
 0x1e8   : > { %p838_p8 = pneg %p837_p7 }
 0x1ea   : > { %927 = dma.done.wait (%p838_p8), %s618_s15, 256  }
 0x1eb   : > { %929 = vsyncadd (%p838_p8), %s618_s15, 4294967040  ;;  %p17_p9 = scmp.ge.s32.totalorder %s1015_s30, 6   ;;  %s1137_s24 = smov %s936_s25 }
 0x1ec   : > { %s1138_s25 = smov %s940_s26  ;;  %s1139_s26 = smov %s1026_s10 }
 0x1ed   : > { %s1140_s27 = smov %s1015_s30  ;;  %19 = sbr.rel (!%p17_p9) target bundleno = 3 (0x3), region = 95 }
 0x1f2   :  { %624 = vsyncpa [#allocation3], 1 }
 0x1f3   :  { %626 = vsyncpa [#allocation3 + $0x1], 1 }

</bundles_post_ra>
